<compile_context>
chip_gen: v7x
topology: tpu7x:2x2x1
jax: 0.10.0
libtpu: 0.0.40
codegen_flags: <defaults>
</compile_context>

<pallas_src>
import functools

import jax
import jax.numpy as jnp
from jax.experimental import pallas as pl
from jax.experimental.pallas import tpu as pltpu

DEGREE = 3
NUM_FEATURES = (DEGREE + 1) * (DEGREE + 2) // 2  # 10

_MAX_LANE_UNITS = 8    # c <= 8 * 128 = 1024 lanes
_MAX_ROW_UNITS = 64    # tr <= 64 * 8 = 512 rows
_TARGET_STEPS = 4      # desired minimum grid steps when the data allows


def _choose_tiling(n):
    """Pick (c, tr, r): lane width, tile rows, padded total rows.

    c % 128 == 0, tr % 8 == 0, r % tr == 0, r * c >= n.
    """
    unit = 8 * 128                                  # minimum (8,128) tile
    n_units = -(-n // unit)
    steps = min(n_units, _TARGET_STEPS)
    lane_units = min(_MAX_LANE_UNITS, max(1, n_units // steps))
    c = lane_units * 128
    rows_needed = -(-n // c)
    row_blocks = -(-rows_needed // 8)
    tr_blocks = min(_MAX_ROW_UNITS, -(-row_blocks // steps))
    tr = tr_blocks * 8
    grid = -(-rows_needed // tr)
    r = grid * tr
    return c, tr, r


def _poly_linear_kernel(w_ref, b_ref, x_ref, o_ref, *, degree):
    # w_ref: [NUM_FEATURES] f32 SMEM, b_ref: [1] f32 SMEM
    # x_ref: [2, TR, C] f32 VMEM (plane 0 = x[:, 0], plane 1 = x[:, 1])
    # o_ref: [TR, C] f32 VMEM
    x0 = x_ref[0]
    x1 = x_ref[1]

    # Start offset of weight group i (PyTorch double-loop ordering).
    offs = []
    k = 0
    for i in range(degree + 1):
        offs.append(k)
        k += degree + 1 - i

    # Nested Horner: acc = (((P_d) * x0 + P_{d-1}) * x0 + ...) * x0 + P_0,
    # where P_i(x1) = sum_j w[off_i + j] * x1**j is itself evaluated by
    # Horner in x1, and the bias is folded into the (i=0, j=0) term.
    acc = None
    for i in range(degree, -1, -1):
        nj = degree + 1 - i          # number of x1 terms in group i
        base = offs[i]
        p = w_ref[base + nj - 1]     # scalar seed; vector after first FMA
        for j in range(nj - 2, -1, -1):
            wk = w_ref[base + j]
            if i == 0 and j == 0:
                wk = wk + b_ref[0]   # fold the bias into the constant term
            p = p * x1 + wk
        acc = p if acc is None else acc * x0 + p

    o_ref[...] = acc


@functools.partial(jax.jit, static_argnames=("degree",))
def polynomial_regression(x, w, b, *, degree=DEGREE):
    """x: [N, 2] f32, w: [num_features] f32, b: [1] f32 -> [N, 1] f32."""
    assert degree >= 1
    num_features = (degree + 1) * (degree + 2) // 2
    assert w.shape == (num_features,), (w.shape, num_features)
    assert b.shape == (1,), b.shape

    n = x.shape[0]
    c, tr, r = _choose_tiling(n)
    pad = r * c - n

    # One fused layout pass: [N, 2] -> [2, R, C] slab (transpose+pad+reshape).
    x_slab = jnp.pad(x.T, ((0, 0), (0, pad))).reshape(2, r, c)

    kernel = functools.partial(_poly_linear_kernel, degree=degree)
    out = pl.pallas_call(
        kernel,
        out_shape=jax.ShapeDtypeStruct((r, c), jnp.float32),
        grid_spec=pltpu.PrefetchScalarGridSpec(
            num_scalar_prefetch=0,
            grid=(r // tr,),
            in_specs=[
                pl.BlockSpec(memory_space=pltpu.MemorySpace.SMEM),  # w [10]
                pl.BlockSpec(memory_space=pltpu.MemorySpace.SMEM),  # b [1]
                pl.BlockSpec((2, tr, c), lambda i: (0, i, 0)),       # x slab
            ],
            out_specs=pl.BlockSpec((tr, c), lambda i: (i, 0)),
        ),
        compiler_params=pltpu.CompilerParams(
            dimension_semantics=("parallel",),
        ),
    )(w, b, x_slab)

    # Drop padding, restore the module's [N, 1] output shape (fused under jit).
    return out.reshape(r * c)[:n].reshape(n, 1)


def _reference(x, w, b, degree=DEGREE):
    feats = []
    for i in range(degree + 1):
        for j in range(degree + 1 - i):
            feats.append((x[:, 0] ** i * x[:, 1] ** j)[:, None])
    feats = jnp.concatenate(feats, axis=1)
    return feats @ w[:, None] + b[0]


if __name__ == "__main__":
    key = jax.random.PRNGKey(0)
    kx, kw, kb = jax.random.split(key, 3)

    # Small batch of 2-D inputs, consistent with the module's forward.
    # Non-multiple of the (8,128) tile to exercise the padding path.
    N = 1000
    x = jax.random.normal(kx, (N, 2), dtype=jnp.float32)

    # Deterministic nn.Linear(10, 1)-style init: U(-1/sqrt(10), 1/sqrt(10)).
    bound = 1.0 / (NUM_FEATURES ** 0.5)
    w = jax.random.uniform(kw, (NUM_FEATURES,), jnp.float32, -bound, bound)
    b = jax.random.uniform(kb, (1,), jnp.float32, -bound, bound)

    out = jax.block_until_ready(polynomial_regression(x, w, b))
    ref = _reference(x, w, b)
    assert out.shape == (N, 1), out.shape
    assert jnp.allclose(out, ref, atol=1e-4, rtol=1e-5), (out, ref)

    # Second, slightly larger shape exercising a multi-step grid and the
    # adaptive-tiling path.
    N2 = 4500
    x2 = jax.random.normal(kx, (N2, 2), dtype=jnp.float32)
    out2 = jax.block_until_ready(polynomial_regression(x2, w, b))
    ref2 = _reference(x2, w, b)
    assert out2.shape == (N2, 1), out2.shape
    assert jnp.allclose(out2, ref2, atol=1e-4, rtol=1e-5), (out2, ref2)

    print("KERNEL_OK")
</pallas_src>

<mosaic_0001>
module attributes {stable_mosaic.version = 11 : i64} {
  func.func @_poly_linear_kernel(%arg0: i32, %arg1: memref<10xf32, #tpu.memory_space<smem>>, %arg2: memref<1xf32, #tpu.memory_space<smem>>, %arg3: memref<2x8x128xf32, #tpu.memory_space<vmem>>, %arg4: memref<8x128xf32, #tpu.memory_space<vmem>>) attributes {dimension_semantics = [#tpu.dimension_semantics<parallel>], iteration_bounds = array<i64: 1>, scalar_prefetch = 0 : i64, scratch_operands = 0 : i64, tpu.core_type = #tpu.core_type<tc>, window_params = [{transform_indices = @transform_0, window_bounds = array<i64: 10>}, {transform_indices = @transform_1, window_bounds = array<i64: 1>}, {transform_indices = @transform_2, window_bounds = array<i64: 2, 8, 128>}, {transform_indices = @transform_3, window_bounds = array<i64: 8, 128>}]} {
    %c0 = arith.constant 0 : index
    %c0_0 = arith.constant 0 : index
    %c0_1 = arith.constant 0 : index
    %0 = vector.load %arg3[%c0, %c0_0, %c0_1] : memref<2x8x128xf32, #tpu.memory_space<vmem>>, vector<1x8x128xf32>
    %1 = vector.shape_cast %0 : vector<1x8x128xf32> to vector<8x128xf32>
    %c1 = arith.constant 1 : index
    %c0_2 = arith.constant 0 : index
    %c0_3 = arith.constant 0 : index
    %2 = vector.load %arg3[%c1, %c0_2, %c0_3] : memref<2x8x128xf32, #tpu.memory_space<vmem>>, vector<1x8x128xf32>
    %3 = vector.shape_cast %2 : vector<1x8x128xf32> to vector<8x128xf32>
    %c9 = arith.constant 9 : index
    %4 = memref.load %arg1[%c9] : memref<10xf32, #tpu.memory_space<smem>>
    %c8 = arith.constant 8 : index
    %5 = memref.load %arg1[%c8] : memref<10xf32, #tpu.memory_space<smem>>
    %c7 = arith.constant 7 : index
    %6 = memref.load %arg1[%c7] : memref<10xf32, #tpu.memory_space<smem>>
    %7 = vector.broadcast %5 : f32 to vector<8x128xf32>
    %8 = arith.mulf %7, %3 : vector<8x128xf32>
    %9 = vector.broadcast %6 : f32 to vector<8x128xf32>
    %10 = arith.addf %8, %9 : vector<8x128xf32>
    %11 = vector.broadcast %4 : f32 to vector<8x128xf32>
    %12 = arith.mulf %11, %1 : vector<8x128xf32>
    %13 = arith.addf %12, %10 : vector<8x128xf32>
    %c6 = arith.constant 6 : index
    %14 = memref.load %arg1[%c6] : memref<10xf32, #tpu.memory_space<smem>>
    %c5 = arith.constant 5 : index
    %15 = memref.load %arg1[%c5] : memref<10xf32, #tpu.memory_space<smem>>
    %16 = vector.broadcast %14 : f32 to vector<8x128xf32>
    %17 = arith.mulf %16, %3 : vector<8x128xf32>
    %18 = vector.broadcast %15 : f32 to vector<8x128xf32>
    %19 = arith.addf %17, %18 : vector<8x128xf32>
    %c4 = arith.constant 4 : index
    %20 = memref.load %arg1[%c4] : memref<10xf32, #tpu.memory_space<smem>>
    %21 = arith.mulf %19, %3 : vector<8x128xf32>
    %22 = vector.broadcast %20 : f32 to vector<8x128xf32>
    %23 = arith.addf %21, %22 : vector<8x128xf32>
    %24 = arith.mulf %13, %1 : vector<8x128xf32>
    %25 = arith.addf %24, %23 : vector<8x128xf32>
    %c3 = arith.constant 3 : index
    %26 = memref.load %arg1[%c3] : memref<10xf32, #tpu.memory_space<smem>>
    %c2 = arith.constant 2 : index
    %27 = memref.load %arg1[%c2] : memref<10xf32, #tpu.memory_space<smem>>
    %28 = vector.broadcast %26 : f32 to vector<8x128xf32>
    %29 = arith.mulf %28, %3 : vector<8x128xf32>
    %30 = vector.broadcast %27 : f32 to vector<8x128xf32>
    %31 = arith.addf %29, %30 : vector<8x128xf32>
    %c1_4 = arith.constant 1 : index
    %32 = memref.load %arg1[%c1_4] : memref<10xf32, #tpu.memory_space<smem>>
    %33 = arith.mulf %31, %3 : vector<8x128xf32>
    %34 = vector.broadcast %32 : f32 to vector<8x128xf32>
    %35 = arith.addf %33, %34 : vector<8x128xf32>
    %c0_5 = arith.constant 0 : index
    %36 = memref.load %arg1[%c0_5] : memref<10xf32, #tpu.memory_space<smem>>
    %c0_6 = arith.constant 0 : index
    %37 = memref.load %arg2[%c0_6] : memref<1xf32, #tpu.memory_space<smem>>
    %38 = arith.addf %36, %37 : f32
    %39 = arith.mulf %35, %3 : vector<8x128xf32>
    %40 = vector.broadcast %38 : f32 to vector<8x128xf32>
    %41 = arith.addf %39, %40 : vector<8x128xf32>
    %42 = arith.mulf %25, %1 : vector<8x128xf32>
    %43 = arith.addf %42, %41 : vector<8x128xf32>
    %c0_7 = arith.constant 0 : index
    %c0_8 = arith.constant 0 : index
    %44 = vector.load %arg4[%c0_7, %c0_8] : memref<8x128xf32, #tpu.memory_space<vmem>>, vector<8x128xf32>
    tpu.vector_store %arg4[%c0_7, %c0_8], %43 {strides = array<i32>} : memref<8x128xf32, #tpu.memory_space<vmem>>, vector<8x128xf32>,
    return
  }
  func.func @transform_0(%arg0: i32) -> i32 {
    %c0_i32 = arith.constant 0 : i32
    %c0_i32_0 = arith.constant 0 : i32
    return %c0_i32 : i32
  }
  func.func @transform_1(%arg0: i32) -> i32 {
    %c0_i32 = arith.constant 0 : i32
    %c0_i32_0 = arith.constant 0 : i32
    return %c0_i32 : i32
  }
  func.func @transform_2(%arg0: i32) -> (i32, i32, i32) {
    %c0_i32 = arith.constant 0 : i32
    %c0_i32_0 = arith.constant 0 : i32
    %c0_i32_1 = arith.constant 0 : i32
    return %c0_i32, %arg0, %c0_i32_0 : i32, i32, i32
  }
  func.func @transform_3(%arg0: i32) -> (i32, i32) {
    %c0_i32 = arith.constant 0 : i32
    %c0_i32_0 = arith.constant 0 : i32
    return %arg0, %c0_i32 : i32, i32
  }
}

</mosaic_0001>

<bundles_post_ra>
// kernel: polynomial_regression.1
= control target key start
LH: loop header
LB: loop body
LE: loop exit
PB: predicated region body
PF: predicated region fallthrough
CT: control target
= control target key end

     0   :  { %9 = vsyncpa [#allocation5], 0  ;;  %s184_s0 = inlined_call_operand.vmem [shape: f32[10], index: 0, kind: input, shape index: {}]   ;;  %s185_s1 = inlined_call_operand.<no memory space> [shape: f32[1], index: 1, kind: input, shape index: {}]   ;;  %s186_s2 = inlined_call_operand.vmem [shape: f32[2,8,128], index: 2, kind: input, shape index: {}]   ;;  %s187_s3 = inlined_call_operand.hbm [shape: f32[8,128], index: 3, kind: output, shape index: {}]  }
   0x1   :  { %10 = vsyncpa [#allocation4], 0  ;;  %s17_s14 = sshll.u32 %s184_s0, 4  ;;  %s18_s14 = int_to_ptr.vmem [resolvable:$true] %s17_s14 }
   0x2   :  { %s100_s15 = scalar_lea.vmem %s18_s14, 16  ;;  %p105_p1 = scmp.lt.s32.totalorder %s18_s14, %s18_s14 }
   0x3   :  { %p101_p0 = scmp.ne.s32.totalorder %s18_s14, %s100_s15  ;;  %p106_p2 = scmp.lt.s32.totalorder %s100_s15, %s100_s15 }
   0x5   :  { %p107_p3 = por %p106_p2, %p105_p1 }
   0x7   :  { %p108_p4 = pnand %p107_p3, %p101_p0 }
   0x9   :  { %111 = shalt.err (!%p108_p4)
}
   0xa   :  { %s138_s16 = smov [#allocation3]  }
   0xb   :  { %20 = dma.vmem_to_smem %s18_s14, 16, %s138_s16, [#allocation5]  }
   0xc   :  { %134 = dma.done.wait [#allocation5], 16  }
   0xd   :  { %135 = vsyncadd [#allocation5], 4294967280 }
   0xe   :  { %28 = sfence }
   0xf   :  { %s89_s17 = sld [smem:[#allocation3 + $0x9]]  ;;  %s90_s18 = sld [smem:[#allocation3 + $0x8]]  ;;  %v29_v0 = vld [vmem:[%s186_s2] sm:$0xff]  ;;  %v88_v1 = vld [vmem:[%s186_s2 + $0x8] sm:$0xff] }
  0x10   :  { %s91_s19 = sld [smem:[#allocation3 + $0x7]]  ;;  %s92_s20 = sld [smem:[#allocation3 + $0x6]] }
  0x11   :  { %s93_s21 = sld [smem:[#allocation3 + $0x5]]  ;;  %s94_s22 = sld [smem:[#allocation3 + $0x4]] }
  0x12   :  { %s95_s0 = sld [smem:[#allocation3 + $0x3]]  ;;  %s96_s23 = sld [smem:[#allocation3 + $0x2]] }
  0x13   :  { %s97_s28 = sld [smem:[#allocation3 + $0x1]]  ;;  %s64_s29 = sld [smem:[#allocation3]] }
  0x14   :  { %s139_s5 = smov [#allocation6]  }
  0x15   :  { %v35_v2 = vstv %s90_s18  ;;  %v39_v3 = vstv %s89_s17  ;;  %s79_s6 = sshll.u32 %s139_s5, 4  ;;  %s80_s6 = int_to_ptr.vmem [resolvable:$true] %s79_s6 }
  0x16   :  { %v36_v4 = vmul.f32 %v88_v1, %v35_v2  ;;  %v37_v5 = vstv %s91_s19  ;;  %v40_v6 = vmul.f32 %v39_v3, %v29_v0  ;;  %v44_v7 = vstv %s92_s20  ;;  %s112_s7 = scalar_lea.vmem %s80_s6, 128  ;;  %p117_p6 = scmp.lt.s32.totalorder %s80_s6, %s80_s6 }
  0x17   :  { %v45_v8 = vmul.f32 %v88_v1, %v44_v7  ;;  %v46_v9 = vstv %s93_s21  ;;  %v50_v16 = vstv %s94_s22  ;;  %p113_p5 = scmp.ne.s32.totalorder %s80_s6, %s112_s7  ;;  %p118_p7 = scmp.lt.s32.totalorder %s112_s7, %s112_s7 }
  0x18   :  { %v38_v10 = vadd.f32 %v37_v5, %v36_v4  ;;  %v56_v11 = vstv %s95_s0  ;;  %v58_v12 = vstv %s96_s23 }
  0x19   :  { %v47_v13 = vadd.f32 %v46_v9, %v45_v8  ;;  %v57_v14 = vmul.f32 %v88_v1, %v56_v11  ;;  %v62_v20 = vstv %s97_s28  ;;  %s66_s4 = sadd.f32 %s64_s29, %s185_s1  ;;  %p119_p8 = por %p118_p7, %p117_p6 }
  0x1a   :  { %v41_v15 = vadd.f32 %v40_v6, %v38_v10 }
  0x1b   :  { %v49_v17 = vmul.f32 %v88_v1, %v47_v13  ;;  %v59_v18 = vadd.f32 %v58_v12, %v57_v14  ;;  %v68_v25 = vstv %s66_s4  ;;  %p120_p9 = pnand %p119_p8, %p113_p5 }
  0x1c   :  { %v52_v19 = vmul.f32 %v41_v15, %v29_v0 }
  0x1d   :  { %v51_v21 = vadd.f32 %v50_v16, %v49_v17  ;;  %v61_v22 = vmul.f32 %v88_v1, %v59_v18 }
  0x1f   :  { %v53_v23 = vadd.f32 %v52_v19, %v51_v21  ;;  %v63_v24 = vadd.f32 %v62_v20, %v61_v22 }
  0x21   :  { %v67_v26 = vmul.f32 %v88_v1, %v63_v24  ;;  %v70_v27 = vmul.f32 %v53_v23, %v29_v0 }
  0x23   :  { %v69_v28 = vadd.f32 %v68_v25, %v67_v26 }
  0x25   :  { %v71_v29 = vadd.f32 %v70_v27, %v69_v28 }
  0x27   :  { %72 = vst [vmem:[#allocation6] sm:$0xff] %v71_v29 }
  0x28   :  { %123 = shalt.err (!%p120_p9)
}
  0x29   :  { %s124_s9 = scalar_lea.hbm %s187_s3, 128 }
  0x2a   :  { %p125_p10 = scmp.ne.s32.totalorder %s187_s3, %s124_s9  ;;  %p128_p11 = scmp.lt.u32.totalorder %s124_s9, %s187_s3 }
  0x2c   :  { %p130_p12 = pnand %p128_p11, %p125_p10 }
  0x2e   :  { %133 = shalt.err (!%p130_p12)
}
  0x2f   :  { %82 = dma.vmem_to_hbm [thread:$0]  %s80_s6, 128, %s187_s3, [#allocation4]  }
  0x30   :  { %136 = dma.done.wait [#allocation4], 128  }
  0x31   :  { %137 = vsyncadd [#allocation4], 4294967168 }
  0x32   :  { %86 = vsyncpa [#allocation4], 1 }
  0x33   :  { %87 = vsyncpa [#allocation5], 1 }

</bundles_post_ra>
